<compile_context>
chip_gen: v5e
topology: v5e:2x2
jax: 0.10.0
libtpu: 0.0.40
codegen_flags: <defaults>
</compile_context>

<pallas_src>
from functools import partial
from math import log, sqrt

import jax
import jax.numpy as jnp
from jax.experimental import pallas as pl
from jax.experimental.pallas import tpu as pltpu


def _lsa_kernel(heads, dim_head, scale_ref, x_ref, wqkv_ref, wo_ref, bo_ref, o_ref):
    inner = heads * dim_head
    in_dt = x_ref.dtype
    x = x_ref[0]                                   # (N, dim)
    n = x.shape[0]

    # Fused QKV projection: one MXU matmul, contraction K = dim (>=128).
    qkv = jnp.dot(x, wqkv_ref[...], preferred_element_type=jnp.float32)  # (N, 3*inner) f32

    scale = scale_ref[0]                           # exp(temperature), f32 scalar in SMEM

    # Diagonal self-attention mask (token cannot attend to itself) — built once
    # per grid step, shared by all heads.
    rows = jax.lax.broadcasted_iota(jnp.int32, (n, n), 0)
    cols = jax.lax.broadcasted_iota(jnp.int32, (n, n), 1)
    diag = rows == cols
    neg_max = jnp.float32(-jnp.finfo(jnp.float32).max)

    ctx = []
    for h in range(heads):                         # static unroll; heads is small
        lo = h * dim_head
        # Scale q (N*d multiplies) instead of the (N,N) dots.
        q = (qkv[:, lo:lo + dim_head] * scale).astype(in_dt)             # (N, d)
        k = qkv[:, inner + lo:inner + lo + dim_head].astype(in_dt)       # (N, d)
        v = qkv[:, 2 * inner + lo:2 * inner + lo + dim_head].astype(in_dt)

        dots = jax.lax.dot_general(q, k, (((1,), (1,)), ((), ())),
                                   preferred_element_type=jnp.float32)   # (N, N) f32
        dots = jnp.where(diag, neg_max, dots)      # keep where() form (no -inf/NaN risk)

        # Numerically stable softmax; normalization deferred past attn@v so it
        # is an (N,d) multiply by an EUP reciprocal instead of an (N,N) divide.
        m = jnp.max(dots, axis=-1, keepdims=True)
        e = jnp.exp(dots - m)
        denom = jnp.sum(e, axis=-1, keepdims=True)                        # (N, 1)
        oh = jnp.dot(e.astype(in_dt), v, preferred_element_type=jnp.float32)  # (N, d)
        ctx.append(oh * pl.reciprocal(denom, approx=False))

    # 'b h n d -> b n (h d)': lane-concatenate the per-head contexts.
    ctx = jnp.concatenate(ctx, axis=-1).astype(in_dt)                     # (N, inner)

    # Output projection: one MXU matmul, contraction K = inner (>=128), + bias.
    out = jnp.dot(ctx, wo_ref[...], preferred_element_type=jnp.float32)
    o_ref[0] = (out + bo_ref[...].astype(jnp.float32)).astype(o_ref.dtype)


def lsa_forward(x, wqkv, wo, bo, temperature, *, heads):
    """x: (B, N, dim). wqkv: (dim, 3*inner) [= to_qkv.weight.T].
    wo: (inner, dim) [= to_out Linear weight.T]. bo: (dim,). temperature: scalar.

    For v6e/v7x, cast x / wqkv / wo to bf16 at the call site; accumulation and
    softmax stay in f32 inside the kernel."""
    B, N, dim = x.shape
    inner = wqkv.shape[1] // 3
    dim_head = inner // heads
    assert inner == heads * dim_head

    scale = jnp.exp(temperature).reshape(1).astype(jnp.float32)
    bo_2d = bo.reshape(1, dim)

    kernel = partial(_lsa_kernel, heads, dim_head)
    return pl.pallas_call(
        kernel,
        out_shape=jax.ShapeDtypeStruct((B, N, dim), x.dtype),
        grid_spec=pltpu.PrefetchScalarGridSpec(
            num_scalar_prefetch=0,
            grid=(B,),
            in_specs=[
                pl.BlockSpec(memory_space=pltpu.MemorySpace.SMEM),    # exp(temperature)
                pl.BlockSpec((1, N, dim), lambda b: (b, 0, 0)),       # x[b]
                # Constant index_maps -> weights DMA'd once, VMEM-resident.
                pl.BlockSpec((dim, 3 * inner), lambda b: (0, 0)),     # Wqkv (as stored)
                pl.BlockSpec((inner, dim), lambda b: (0, 0)),         # Wo
                pl.BlockSpec((1, dim), lambda b: (0, 0)),             # out bias
            ],
            out_specs=pl.BlockSpec((1, N, dim), lambda b: (b, 0, 0)),
        ),
        compiler_params=pltpu.CompilerParams(
            dimension_semantics=("parallel",),
        ),
    )(scale, x, wqkv, wo, bo_2d)


def lsa_ref(x, wqkv, wo, bo, temperature, *, heads):
    """Pure-JAX reference matching the PyTorch LSA forward."""
    B, N, dim = x.shape
    inner = wqkv.shape[1] // 3
    d = inner // heads
    qkv = jnp.dot(x, wqkv)
    q, k, v = jnp.split(qkv, 3, axis=-1)

    def to_heads(t):
        return t.reshape(B, N, heads, d).transpose(0, 2, 1, 3)

    q, k, v = to_heads(q), to_heads(k), to_heads(v)
    dots = jnp.einsum('bhnd,bhmd->bhnm', q, k) * jnp.exp(temperature)
    eye = jnp.eye(N, dtype=bool)
    dots = jnp.where(eye, -jnp.finfo(dots.dtype).max, dots)
    attn = jax.nn.softmax(dots, axis=-1)
    out = jnp.einsum('bhnm,bhmd->bhnd', attn, v)
    out = out.transpose(0, 2, 1, 3).reshape(B, N, inner)
    return jnp.dot(out, wo) + bo


if __name__ == "__main__":
    # Small shapes, lane-dense: dim = inner_dim = 128.
    batch, seq, dim, heads, dim_head = 2, 16, 128, 4, 32
    inner = heads * dim_head

    key = jax.random.PRNGKey(0)
    kx, k1, k2, k3 = jax.random.split(key, 4)
    x = jax.random.normal(kx, (batch, seq, dim), jnp.float32)

    # nn.Linear default init (uniform +-1/sqrt(fan_in)); weights stored (in, out).
    b_qkv = 1.0 / sqrt(dim)
    b_out = 1.0 / sqrt(inner)
    wqkv = jax.random.uniform(k1, (dim, 3 * inner), jnp.float32, -b_qkv, b_qkv)
    wo = jax.random.uniform(k2, (inner, dim), jnp.float32, -b_out, b_out)
    bo = jax.random.uniform(k3, (dim,), jnp.float32, -b_out, b_out)
    temperature = jnp.array(log(dim_head ** -0.5), jnp.float32)

    out = lsa_forward(x, wqkv, wo, bo, temperature, heads=heads)
    out = jax.block_until_ready(out)

    ref = lsa_ref(x, wqkv, wo, bo, temperature, heads=heads)
    assert out.shape == (batch, seq, dim)
    err = float(jnp.max(jnp.abs(out - ref)))
    assert jnp.allclose(out, ref, atol=1e-4, rtol=1e-4), err

    print("KERNEL_OK")
</pallas_src>

<mosaic_0001>
module attributes {stable_mosaic.version = 11 : i64} {
  func.func @_lsa_kernel(%arg0: i32, %arg1: memref<1xf32, #tpu.memory_space<smem>>, %arg2: memref<1x16x128xf32, #tpu.memory_space<vmem>>, %arg3: memref<128x384xf32, #tpu.memory_space<vmem>>, %arg4: memref<128x128xf32, #tpu.memory_space<vmem>>, %arg5: memref<1x128xf32, #tpu.memory_space<vmem>>, %arg6: memref<1x16x128xf32, #tpu.memory_space<vmem>>) attributes {dimension_semantics = [#tpu.dimension_semantics<parallel>], iteration_bounds = array<i64: 2>, scalar_prefetch = 0 : i64, scratch_operands = 0 : i64, tpu.core_type = #tpu.core_type<tc>, window_params = [{transform_indices = @transform_0, window_bounds = array<i64: 1>}, {transform_indices = @transform_1, window_bounds = array<i64: 1, 16, 128>}, {pipeline_mode = #tpu.pipeline_mode<synchronous>, transform_indices = @transform_2, window_bounds = array<i64: 128, 384>}, {pipeline_mode = #tpu.pipeline_mode<synchronous>, transform_indices = @transform_3, window_bounds = array<i64: 128, 128>}, {pipeline_mode = #tpu.pipeline_mode<synchronous>, transform_indices = @transform_4, window_bounds = array<i64: 1, 128>}, {transform_indices = @transform_5, window_bounds = array<i64: 1, 16, 128>}]} {
    %c0 = arith.constant 0 : index
    %c0_0 = arith.constant 0 : index
    %c0_1 = arith.constant 0 : index
    %0 = vector.load %arg2[%c0, %c0_0, %c0_1] : memref<1x16x128xf32, #tpu.memory_space<vmem>>, vector<1x16x128xf32>
    %1 = vector.shape_cast %0 : vector<1x16x128xf32> to vector<16x128xf32>
    %c0_2 = arith.constant 0 : index
    %c0_3 = arith.constant 0 : index
    %2 = vector.load %arg3[%c0_2, %c0_3] : memref<128x384xf32, #tpu.memory_space<vmem>>, vector<128x384xf32>
    %cst = arith.constant dense<0.000000e+00> : vector<16x384xf32>
    %3 = tpu.matmul %1, %2, %cst {dimension_numbers = #tpu.dot_dimension_numbers<[1], [0], [0], [1], [0, 0, 1, 1], [], []>} : vector<16x128xf32>, vector<128x384xf32>, vector<16x384xf32> -> vector<16x384xf32>
    %c0_4 = arith.constant 0 : index
    %4 = memref.load %arg1[%c0_4] : memref<1xf32, #tpu.memory_space<smem>>
    %5 = tpu.iota {dimensions = array<i32: 0>} : vector<16x16xi32>
    %6 = tpu.iota {dimensions = array<i32: 1>} : vector<16x16xi32>
    %7 = arith.cmpi eq, %5, %6 : vector<16x16xi32>
    %8 = vector.extract_strided_slice %3 {offsets = [0, 0], sizes = [16, 32], strides = [1, 1]} : vector<16x384xf32> to vector<16x32xf32>
    %9 = vector.broadcast %4 : f32 to vector<16x32xf32>
    %10 = arith.mulf %8, %9 : vector<16x32xf32>
    %11 = vector.extract_strided_slice %3 {offsets = [0, 128], sizes = [16, 32], strides = [1, 1]} : vector<16x384xf32> to vector<16x32xf32>
    %12 = vector.extract_strided_slice %3 {offsets = [0, 256], sizes = [16, 32], strides = [1, 1]} : vector<16x384xf32> to vector<16x32xf32>
    %cst_5 = arith.constant dense<0.000000e+00> : vector<16x16xf32>
    %13 = tpu.matmul %10, %11, %cst_5 {dimension_numbers = #tpu.dot_dimension_numbers<[1], [1], [0], [0], [0, 0, 1, 0], [], []>} : vector<16x32xf32>, vector<16x32xf32>, vector<16x16xf32> -> vector<16x16xf32>
    %cst_6 = arith.constant -3.40282347E+38 : f32
    %14 = vector.broadcast %cst_6 : f32 to vector<16x16xf32>
    %15 = arith.select %7, %14, %13 : vector<16x16xi1>, vector<16x16xf32>
    %cst_7 = arith.constant dense<0xFF800000> : vector<16xf32>
    %16 = vector.multi_reduction <maximumf>, %15, %cst_7 [1] : vector<16x16xf32> to vector<16xf32>
    %17 = vector.shape_cast %16 : vector<16xf32> to vector<16x1xf32>
    %18 = vector.broadcast %17 : vector<16x1xf32> to vector<16x16xf32>
    %19 = arith.subf %15, %18 : vector<16x16xf32>
    %20 = math.exp %19 : vector<16x16xf32>
    %cst_8 = arith.constant dense<0.000000e+00> : vector<16xf32>
    %21 = vector.multi_reduction <add>, %20, %cst_8 [1] : vector<16x16xf32> to vector<16xf32>
    %22 = vector.shape_cast %21 : vector<16xf32> to vector<16x1xf32>
    %cst_9 = arith.constant dense<0.000000e+00> : vector<16x32xf32>
    %23 = tpu.matmul %20, %12, %cst_9 {dimension_numbers = #tpu.dot_dimension_numbers<[1], [0], [0], [1], [0, 0, 1, 1], [], []>} : vector<16x16xf32>, vector<16x32xf32>, vector<16x32xf32> -> vector<16x32xf32>
    %24 = tpu.reciprocal %22 : vector<16x1xf32> -> vector<16x1xf32>
    %25 = vector.broadcast %24 : vector<16x1xf32> to vector<16x32xf32>
    %26 = arith.mulf %23, %25 : vector<16x32xf32>
    %27 = vector.extract_strided_slice %3 {offsets = [0, 32], sizes = [16, 32], strides = [1, 1]} : vector<16x384xf32> to vector<16x32xf32>
    %28 = vector.broadcast %4 : f32 to vector<16x32xf32>
    %29 = arith.mulf %27, %28 : vector<16x32xf32>
    %30 = vector.extract_strided_slice %3 {offsets = [0, 160], sizes = [16, 32], strides = [1, 1]} : vector<16x384xf32> to vector<16x32xf32>
    %31 = vector.extract_strided_slice %3 {offsets = [0, 288], sizes = [16, 32], strides = [1, 1]} : vector<16x384xf32> to vector<16x32xf32>
    %cst_10 = arith.constant dense<0.000000e+00> : vector<16x16xf32>
    %32 = tpu.matmul %29, %30, %cst_10 {dimension_numbers = #tpu.dot_dimension_numbers<[1], [1], [0], [0], [0, 0, 1, 0], [], []>} : vector<16x32xf32>, vector<16x32xf32>, vector<16x16xf32> -> vector<16x16xf32>
    %cst_11 = arith.constant -3.40282347E+38 : f32
    %33 = vector.broadcast %cst_11 : f32 to vector<16x16xf32>
    %34 = arith.select %7, %33, %32 : vector<16x16xi1>, vector<16x16xf32>
    %cst_12 = arith.constant dense<0xFF800000> : vector<16xf32>
    %35 = vector.multi_reduction <maximumf>, %34, %cst_12 [1] : vector<16x16xf32> to vector<16xf32>
    %36 = vector.shape_cast %35 : vector<16xf32> to vector<16x1xf32>
    %37 = vector.broadcast %36 : vector<16x1xf32> to vector<16x16xf32>
    %38 = arith.subf %34, %37 : vector<16x16xf32>
    %39 = math.exp %38 : vector<16x16xf32>
    %cst_13 = arith.constant dense<0.000000e+00> : vector<16xf32>
    %40 = vector.multi_reduction <add>, %39, %cst_13 [1] : vector<16x16xf32> to vector<16xf32>
    %41 = vector.shape_cast %40 : vector<16xf32> to vector<16x1xf32>
    %cst_14 = arith.constant dense<0.000000e+00> : vector<16x32xf32>
    %42 = tpu.matmul %39, %31, %cst_14 {dimension_numbers = #tpu.dot_dimension_numbers<[1], [0], [0], [1], [0, 0, 1, 1], [], []>} : vector<16x16xf32>, vector<16x32xf32>, vector<16x32xf32> -> vector<16x32xf32>
    %43 = tpu.reciprocal %41 : vector<16x1xf32> -> vector<16x1xf32>
    %44 = vector.broadcast %43 : vector<16x1xf32> to vector<16x32xf32>
    %45 = arith.mulf %42, %44 : vector<16x32xf32>
    %46 = vector.extract_strided_slice %3 {offsets = [0, 64], sizes = [16, 32], strides = [1, 1]} : vector<16x384xf32> to vector<16x32xf32>
    %47 = vector.broadcast %4 : f32 to vector<16x32xf32>
    %48 = arith.mulf %46, %47 : vector<16x32xf32>
    %49 = vector.extract_strided_slice %3 {offsets = [0, 192], sizes = [16, 32], strides = [1, 1]} : vector<16x384xf32> to vector<16x32xf32>
    %50 = vector.extract_strided_slice %3 {offsets = [0, 320], sizes = [16, 32], strides = [1, 1]} : vector<16x384xf32> to vector<16x32xf32>
    %cst_15 = arith.constant dense<0.000000e+00> : vector<16x16xf32>
    %51 = tpu.matmul %48, %49, %cst_15 {dimension_numbers = #tpu.dot_dimension_numbers<[1], [1], [0], [0], [0, 0, 1, 0], [], []>} : vector<16x32xf32>, vector<16x32xf32>, vector<16x16xf32> -> vector<16x16xf32>
    %cst_16 = arith.constant -3.40282347E+38 : f32
    %52 = vector.broadcast %cst_16 : f32 to vector<16x16xf32>
    %53 = arith.select %7, %52, %51 : vector<16x16xi1>, vector<16x16xf32>
    %cst_17 = arith.constant dense<0xFF800000> : vector<16xf32>
    %54 = vector.multi_reduction <maximumf>, %53, %cst_17 [1] : vector<16x16xf32> to vector<16xf32>
    %55 = vector.shape_cast %54 : vector<16xf32> to vector<16x1xf32>
    %56 = vector.broadcast %55 : vector<16x1xf32> to vector<16x16xf32>
    %57 = arith.subf %53, %56 : vector<16x16xf32>
    %58 = math.exp %57 : vector<16x16xf32>
    %cst_18 = arith.constant dense<0.000000e+00> : vector<16xf32>
    %59 = vector.multi_reduction <add>, %58, %cst_18 [1] : vector<16x16xf32> to vector<16xf32>
    %60 = vector.shape_cast %59 : vector<16xf32> to vector<16x1xf32>
    %cst_19 = arith.constant dense<0.000000e+00> : vector<16x32xf32>
    %61 = tpu.matmul %58, %50, %cst_19 {dimension_numbers = #tpu.dot_dimension_numbers<[1], [0], [0], [1], [0, 0, 1, 1], [], []>} : vector<16x16xf32>, vector<16x32xf32>, vector<16x32xf32> -> vector<16x32xf32>
    %62 = tpu.reciprocal %60 : vector<16x1xf32> -> vector<16x1xf32>
    %63 = vector.broadcast %62 : vector<16x1xf32> to vector<16x32xf32>
    %64 = arith.mulf %61, %63 : vector<16x32xf32>
    %65 = vector.extract_strided_slice %3 {offsets = [0, 96], sizes = [16, 32], strides = [1, 1]} : vector<16x384xf32> to vector<16x32xf32>
    %66 = vector.broadcast %4 : f32 to vector<16x32xf32>
    %67 = arith.mulf %65, %66 : vector<16x32xf32>
    %68 = vector.extract_strided_slice %3 {offsets = [0, 224], sizes = [16, 32], strides = [1, 1]} : vector<16x384xf32> to vector<16x32xf32>
    %69 = vector.extract_strided_slice %3 {offsets = [0, 352], sizes = [16, 32], strides = [1, 1]} : vector<16x384xf32> to vector<16x32xf32>
    %cst_20 = arith.constant dense<0.000000e+00> : vector<16x16xf32>
    %70 = tpu.matmul %67, %68, %cst_20 {dimension_numbers = #tpu.dot_dimension_numbers<[1], [1], [0], [0], [0, 0, 1, 0], [], []>} : vector<16x32xf32>, vector<16x32xf32>, vector<16x16xf32> -> vector<16x16xf32>
    %cst_21 = arith.constant -3.40282347E+38 : f32
    %71 = vector.broadcast %cst_21 : f32 to vector<16x16xf32>
    %72 = arith.select %7, %71, %70 : vector<16x16xi1>, vector<16x16xf32>
    %cst_22 = arith.constant dense<0xFF800000> : vector<16xf32>
    %73 = vector.multi_reduction <maximumf>, %72, %cst_22 [1] : vector<16x16xf32> to vector<16xf32>
    %74 = vector.shape_cast %73 : vector<16xf32> to vector<16x1xf32>
    %75 = vector.broadcast %74 : vector<16x1xf32> to vector<16x16xf32>
    %76 = arith.subf %72, %75 : vector<16x16xf32>
    %77 = math.exp %76 : vector<16x16xf32>
    %cst_23 = arith.constant dense<0.000000e+00> : vector<16xf32>
    %78 = vector.multi_reduction <add>, %77, %cst_23 [1] : vector<16x16xf32> to vector<16xf32>
    %79 = vector.shape_cast %78 : vector<16xf32> to vector<16x1xf32>
    %cst_24 = arith.constant dense<0.000000e+00> : vector<16x32xf32>
    %80 = tpu.matmul %77, %69, %cst_24 {dimension_numbers = #tpu.dot_dimension_numbers<[1], [0], [0], [1], [0, 0, 1, 1], [], []>} : vector<16x16xf32>, vector<16x32xf32>, vector<16x32xf32> -> vector<16x32xf32>
    %81 = tpu.reciprocal %79 : vector<16x1xf32> -> vector<16x1xf32>
    %82 = vector.broadcast %81 : vector<16x1xf32> to vector<16x32xf32>
    %83 = arith.mulf %80, %82 : vector<16x32xf32>
    %84 = tpu.concatenate %26, %45, %64, %83 in 1 : vector<16x32xf32>, vector<16x32xf32>, vector<16x32xf32>, vector<16x32xf32> -> vector<16x128xf32>
    %c0_25 = arith.constant 0 : index
    %c0_26 = arith.constant 0 : index
    %85 = vector.load %arg4[%c0_25, %c0_26] : memref<128x128xf32, #tpu.memory_space<vmem>>, vector<128x128xf32>
    %cst_27 = arith.constant dense<0.000000e+00> : vector<16x128xf32>
    %86 = tpu.matmul %84, %85, %cst_27 {dimension_numbers = #tpu.dot_dimension_numbers<[1], [0], [0], [1], [0, 0, 1, 1], [], []>} : vector<16x128xf32>, vector<128x128xf32>, vector<16x128xf32> -> vector<16x128xf32>
    %c0_28 = arith.constant 0 : index
    %c0_29 = arith.constant 0 : index
    %87 = vector.load %arg5[%c0_28, %c0_29] : memref<1x128xf32, #tpu.memory_space<vmem>>, vector<1x128xf32>
    %88 = vector.broadcast %87 : vector<1x128xf32> to vector<16x128xf32>
    %89 = arith.addf %86, %88 : vector<16x128xf32>
    %c0_30 = arith.constant 0 : index
    %c0_31 = arith.constant 0 : index
    %c0_32 = arith.constant 0 : index
    %90 = vector.load %arg6[%c0_30, %c0_31, %c0_32] : memref<1x16x128xf32, #tpu.memory_space<vmem>>, vector<1x16x128xf32>
    %91 = vector.shape_cast %90 : vector<1x16x128xf32> to vector<16x128xf32>
    %92 = vector.shape_cast %89 : vector<16x128xf32> to vector<1x16x128xf32>
    tpu.vector_store %arg6[%c0_30, %c0_31, %c0_32], %92 {strides = array<i32>} : memref<1x16x128xf32, #tpu.memory_space<vmem>>, vector<1x16x128xf32>,
    return
  }
  func.func @transform_0(%arg0: i32) -> i32 {
    %c0_i32 = arith.constant 0 : i32
    %c0_i32_0 = arith.constant 0 : i32
    return %c0_i32 : i32
  }
  func.func @transform_1(%arg0: i32) -> (i32, i32, i32) {
    %c0_i32 = arith.constant 0 : i32
    %c0_i32_0 = arith.constant 0 : i32
    %c0_i32_1 = arith.constant 0 : i32
    return %arg0, %c0_i32, %c0_i32_0 : i32, i32, i32
  }
  func.func @transform_2(%arg0: i32) -> (i32, i32) {
    %c0_i32 = arith.constant 0 : i32
    %c0_i32_0 = arith.constant 0 : i32
    %c0_i32_1 = arith.constant 0 : i32
    return %c0_i32, %c0_i32_0 : i32, i32
  }
  func.func @transform_3(%arg0: i32) -> (i32, i32) {
    %c0_i32 = arith.constant 0 : i32
    %c0_i32_0 = arith.constant 0 : i32
    %c0_i32_1 = arith.constant 0 : i32
    return %c0_i32, %c0_i32_0 : i32, i32
  }
  func.func @transform_4(%arg0: i32) -> (i32, i32) {
    %c0_i32 = arith.constant 0 : i32
    %c0_i32_0 = arith.constant 0 : i32
    %c0_i32_1 = arith.constant 0 : i32
    return %c0_i32, %c0_i32_0 : i32, i32
  }
  func.func @transform_5(%arg0: i32) -> (i32, i32, i32) {
    %c0_i32 = arith.constant 0 : i32
    %c0_i32_0 = arith.constant 0 : i32
    %c0_i32_1 = arith.constant 0 : i32
    return %arg0, %c0_i32, %c0_i32_0 : i32, i32, i32
  }
}

</mosaic_0001>

<bundles_post_ra>
// kernel: tpu_custom_call.1
= control target key start
LH: loop header
LB: loop body
LE: loop exit
PB: predicated region body
PF: predicated region fallthrough
CT: control target
= control target key end

     0   :  { %s1824_s0 = inlined_call_operand.<no memory space> [shape: f32[1], index: 0, kind: input, shape index: {}]   ;;  %s1825_s1 = inlined_call_operand.hbm [shape: f32[2,16,128], index: 1, kind: input, shape index: {}]   ;;  %s1826_s2 = inlined_call_operand.hbm [shape: f32[128,384], index: 2, kind: input, shape index: {}]   ;;  %s1827_s3 = inlined_call_operand.hbm [shape: f32[128,128], index: 3, kind: input, shape index: {}]   ;;  %s1828_s4 = inlined_call_operand.vmem [shape: f32[1,128], index: 4, kind: input, shape index: {}]   ;;  %s1829_s5 = inlined_call_operand.hbm [shape: f32[2,16,128], index: 5, kind: output, shape index: {}]  }
   0x1   :  { %10 = sst [smem:[#allocation2]] %s1824_s0 }
   0x2   :  { %11 = vsyncpa [#allocation4], 0 }
   0x3   :  { %13 = vsyncpa [#allocation4 + $0x1], 0 }
   0x4   :  { %14 = vsyncpa [#allocation7], 0 }
   0x5   :  { %15 = vsyncpa [#allocation5], 0 }
   0x6   :  { %17 = vsyncpa [#allocation5 + $0x1], 0  ;;  %s1458_s20 = smov 0   ;;  %s1460_s21 = smov 0  }
   0x7   :  { %s1462_s22 = smov 0   ;;  %s1464_s23 = smov 0  }
   0x8 LB: > { %s1479_s0 = sadd.s32 4294967295, %s1412_s23   ;;  %s1084_s24 = sadd.s32 4294967294, %s1412_s23   ;;  %s1412_s23 = sphi %s1464_s23, %s1847_s23   ;;  %s1408_s22 = sphi %s1462_s22, %s1846_s22   ;;  %s1404_s21 = sphi %s1460_s21, %s1845_s21   ;;  %s1400_s20 = sphi %s1458_s20, %s1844_s20  }
   0x9   : > { %p64_p0 = scmp.ne.s32.totalorder %s1404_s21, %s1400_s20  ;;  %p65_p1 = scmp.eq.s32.totalorder %s1479_s0, 0 }
   0xa   : > { %p151_p2 = scmp.eq.s32.totalorder %s1479_s0, 1  ;;  %p157_p3 = scmp.eq.s32.totalorder %s1084_s24, 1 }
   0xb   : > { %p1488_p4 = por %p65_p1, %p64_p0  ;;  %p1085_p5 = scmp.ge.s32.totalorder %s1412_s23, 1 }
   0xc   : > { %p1493_p6 = por %p157_p3, %p64_p0  ;;  %p164_p7 = scmp.lt.s32.totalorder %s1412_s23, 3 }
   0xd   : > { %s178_s29 = sshll.u32 %s1826_s2, 4  ;;  %s1414_s6 = smov [#allocation6]   ;;  %s179_s29 = int_to_ptr.hbm [resolvable:$true] %s178_s29 }
   0xe   : > { %p1501_p8 = pnand %p1085_p5, %p164_p7  ;;  %s180_s7 = sshll.u32 %s1414_s6, 4  ;;  %s181_s7 = int_to_ptr.vmem [resolvable:$true] %s180_s7 }
   0xf   : > { %s192_s10 = sshll.u32 %s1827_s3, 4  ;;  %s1415_s11 = smov 384   ;;  %s193_s10 = int_to_ptr.hbm [resolvable:$true] %s192_s10 }
  0x10   : > { %p1140_p9 = pneg %p1501_p8  ;;  %s1416_s12 = smov 24  }
  0x11   : > { %s1417_s13 = smov [#allocation8]   ;;  %s1418_s15 = smov 128  }
  0x12   : > { %p1141_p10 = pnand %p1140_p9, %p65_p1  ;;  %s194_s14 = sshll.u32 %s1417_s13, 4  ;;  %s195_s14 = int_to_ptr.vmem [resolvable:$true] %s194_s14 }
  0x13   : > { %s1419_s16 = smov 8   ;;  %s1517_s17 = sadd.s32 1, %s1412_s23  }
  0x14   : > { %1143 = dma.hbm_to_vmem [thread:$0]  (!%p1141_p10), %s179_s29, 6144, %s181_s7, [#allocation7], %s1415_s11, %s1415_s11, %s1416_s12  }
  0x15   : > { %1146 = dma.hbm_to_vmem [thread:$0]  (!%p1141_p10), %s193_s10, 2048, %s195_s14, [#allocation7], %s1418_s15, %s1418_s15, %s1419_s16  }
  0x16   : > { %s48_s18 = ssub.s32 %s1412_s23, %s1517_s17  ;;  %s51_s19 = sadd.s32 1, %s1408_s22 }
  0x17   : > { %p49_p12 = scmp.eq.s32.totalorder %s48_s18, 0  ;;  %p58_p13 = scmp.ne.s32.totalorder %s1408_s22, %s1404_s21 }
  0x18   : > { %p59_p0 = scmp.eq.s32.totalorder %s1412_s23, 0  ;;  %p1157_p7 = scmp.lt.s32.totalorder %s1412_s23, 2 }
  0x19   : > { %s1526_s24 = scalar_select %p49_p12, %s1408_s22, %s51_s19  }
  0x1a   : > { %p60_p3 = por %p59_p0, %p58_p13  ;;  %p1530_p5 = por %p151_p2, %p58_p13 }
  0x1b   : > { %s211_s28 = sand.u32 1, %s1408_s22   ;;  %s1126_s6 = sshll.u32 %s1412_s23, 4 }
  0x1c   : > { %s1089_s29 = sshll.u32 %s211_s28, 4  ;;  %s220_s9 = scalar_lea.hbm %s1825_s1, %s1126_s6 }
  0x1d   : > { %s215_s10 = scalar_lea.vmem [#allocation3], %s1089_s29  ;;  %s221_s12 = sshll.u32 %s220_s9, 4  ;;  %s222_s12 = int_to_ptr.hbm [resolvable:$true] %s221_s12 }
  0x1e   : > { %s223_s11 = sshll.u32 %s215_s10, 4  ;;  %p1540_p9 = pnand %p1157_p7, %p60_p3  ;;  %s224_s11 = int_to_ptr.vmem [resolvable:$true] %s223_s11 }
  0x1f   : > { %s212_s14 = scalar_lea.sflag [#allocation4], %s211_s28  ;;  %s1312_s18 = sshra.s32 %s222_s12, 4  ;;  %s1313_s18 = int_to_ptr.hbm [resolvable:$true] %s1312_s18 }
  0x20   : > { %s1314_s19 = scalar_lea.hbm %s1313_s18, 16  ;;  %p1316_p10 = pneg %p1540_p9 }
  0x21   : > { %p1315_p2 = scmp.ne.s32.totalorder %s1313_s18, %s1314_s19  ;;  %s1319_s7 = scalar_lea.hbm %s1825_s1, 32 }
  0x22   : > { %p1320_p0 = scmp.lt.s32.totalorder %s1313_s18, %s1825_s1  ;;  %p1321_p3 = scmp.lt.s32.totalorder %s1319_s7, %s1314_s19 }
  0x23   : > { %p1317_p12 = pnand %p1316_p10, %p1315_p2 }
  0x24   : > { %p1322_p7 = por %p1321_p3, %p1320_p0 }
  0x25   : > { %p1318_p13 = pneg %p1317_p12 }
  0x27   : > { %p1323_p11 = pnand %p1322_p7, %p1318_p13 }
  0x29   : > { %1326 = shalt.err (!%p1323_p11)
}
  0x2a   : > { %1150 = dma.hbm_to_vmem [thread:$0]  (!%p1540_p9), %s222_s12, 256, %s224_s11, %s212_s14, %s1418_s15, %s1418_s15, %s1419_s16  }
  0x2b   : > { %235 = sbr.rel (%p1501_p8) target bundleno = 1171 (0x493), region = 40  ;;  %s1560_s28 = sand.u32 (!%p1501_p8), 1, %s1404_s21  }
  0x2c   : > { %s1093_s10 = sshll.u32 (!%p1501_p8), %s1560_s28, 4  ;;  %s238_s18 = scalar_lea.sflag (!%p1501_p8), [#allocation4], %s1560_s28 }
  0x2d   : > { %s1566_s19 = scalar_lea.vmem (!%p1501_p8), [#allocation3], %s1093_s10 }
  0x30   : > { %1387 = dma.done.wait (%p1488_p4), %s238_s18, 256  }
  0x31   : > { %1389 = vsyncadd (%p1488_p4), %s238_s18, 4294967040 }
  0x32   : > { %1391 = dma.done.wait (%p65_p1), [#allocation7], 8192  }
  0x33   : > { %1393 = vsyncadd (%p65_p1), [#allocation7], 4294959104  ;;  %v326_v0 = vld [vmem:[#allocation6 + $0x168] sm:$0xff]  ;;  %v327_v1 = vld [vmem:[#allocation6 + $0x170] sm:$0xff]  ;;  %s398_s25 = sld [smem:[#allocation2]]  ;;  %s1420_s30 = smov 96   ;;  %v399_v63 = vlaneseq }
  0x34   : > { %v323_v2 = vld [vmem:[#allocation6 + $0x150] sm:$0xff]  ;;  %329 = vmatpush.msra.mxu0 %v326_v0  ;;  %352 = vmatpush.msra.mxu1 %v327_v1  ;;  %v324_v3 = vld [vmem:[#allocation6 + $0x158] sm:$0xff]  ;;  %v321_v5 = vld [vmem:[#allocation6 + $0x140] sm:$0xff]  ;;  %vm409_vm0 = vcmask 261120   ;;  %s1421_s15 = smov 64   ;;  %s1422_s16 = smov 32  }
  0x35   : > { %v320_v4 = vld [vmem:[#allocation6 + $0x138] sm:$0xff]  ;;  %v317_v6 = vld [vmem:[#allocation6 + $0x120] sm:$0xff]  ;;  %v318_v7 = vld [vmem:[#allocation6 + $0x128] sm:$0xff]  ;;  %v1595_v0 = vshrl.u32 %v399_v63, 7  ;;  %v1597_v1 = vand.u32 127, %v399_v63  ;;  %vm447_vm2 = vcmask 130048  }
  0x36   : > { %330 = vmatpush.msra.mxu0 %v323_v2  ;;  %353 = vmatpush.msra.mxu1 %v324_v3  ;;  %v314_v8 = vld [vmem:[#allocation6 + $0x108] sm:$0xff]  ;;  %v315_v9 = vld [vmem:[#allocation6 + $0x110] sm:$0xff]  ;;  %v312_v11 = vld [vmem:[#allocation6 + $0xf8] sm:$0xff]  ;;  %s1127_s13 = sshll.u32 %s1479_s0, 4  ;;  %s278_s14 = scalar_lea.vmem [#allocation9], %s1093_s10 }
  0x37   : > { %v311_v10 = vld [vmem:[#allocation6 + $0xf0] sm:$0xff]  ;;  %v308_v12 = vld [vmem:[#allocation6 + $0xd8] sm:$0xff]  ;;  %v309_v13 = vld [vmem:[#allocation6 + $0xe0] sm:$0xff]  ;;  %vm404_vm1 = vcmp.eq.s32.totalorder %v1595_v0, %v1597_v1  ;;  %s988_s7 = scalar_lea.hbm %s1829_s5, %s1127_s13  ;;  %s989_s8 = sshll.u32 %s278_s14, 4  ;;  %s990_s8 = int_to_ptr.vmem [resolvable:$true] %s989_s8 }
  0x38   : > { %331 = vmatpush.msra.mxu0 %v320_v4  ;;  %354 = vmatpush.msra.mxu1 %v321_v5  ;;  %v328_v14 = vld [vmem:[#allocation6 + $0x178] sm:$0xff]  ;;  %v325_v15 = vld [vmem:[#allocation6 + $0x160] sm:$0xff]  ;;  %v306_v17 = vld [vmem:[#allocation6 + $0xc8] sm:$0xff]  ;;  %v1606_v5 = vadd.s32 8, %v1595_v0  ;;  %s991_s9 = sshll.u32 %s988_s7, 4  ;;  %s977_s18 = scalar_lea.sflag [#allocation5], %s1560_s28  ;;  %s992_s9 = int_to_ptr.hbm [resolvable:$true] %s991_s9 }
  0x39   : > { %v305_v16 = vld [vmem:[#allocation6 + $0xc0] sm:$0xff]  ;;  %375 = vmatpush.msra.mxu2 %v328_v14  ;;  %v322_v18 = vld [vmem:[#allocation6 + $0x148] sm:$0xff]  ;;  %v303_v20 = vld [vmem:[#allocation6 + $0xb0] sm:$0xff]  ;;  %v406_v50 = vstv %s398_s25 }
  0x3a   : > { %332 = vmatpush.msra.mxu0 %v317_v6  ;;  %355 = vmatpush.msra.mxu1 %v318_v7  ;;  %v302_v19 = vld [vmem:[#allocation6 + $0xa8] sm:$0xff]  ;;  %v319_v21 = vld [vmem:[#allocation6 + $0x130] sm:$0xff]  ;;  %v300_v23 = vld [vmem:[#allocation6 + $0x98] sm:$0xff]  ;;  %vm405_vm3 = vcmp.eq.s32.totalorder %v1606_v5, %v1597_v1 }
  0x3b   : > { %376 = vmatpush.msra.mxu2 %v325_v15  ;;  %v299_v22 = vld [vmem:[#allocation6 + $0x90] sm:$0xff]  ;;  %v316_v24 = vld [vmem:[#allocation6 + $0x118] sm:$0xff]  ;;  %v297_v26 = vld [vmem:[#allocation6 + $0x80] sm:$0xff] }
  0x3c   : > { %333 = vmatpush.msra.mxu0 %v314_v8  ;;  %356 = vmatpush.msra.mxu1 %v315_v9  ;;  %v296_v25 = vld [vmem:[#allocation6 + $0x78] sm:$0xff]  ;;  %v313_v27 = vld [vmem:[#allocation6 + $0x100] sm:$0xff]  ;;  %v294_v29 = vld [vmem:[#allocation6 + $0x68] sm:$0xff] }
  0x3d   : > { %377 = vmatpush.msra.mxu2 %v322_v18  ;;  %v293_v28 = vld [vmem:[#allocation6 + $0x60] sm:$0xff]  ;;  %v310_v30 = vld [vmem:[#allocation6 + $0xe8] sm:$0xff]  ;;  %v291_v32 = vld [vmem:[#allocation6 + $0x50] sm:$0xff] }
  0x3e   : > { %334 = vmatpush.msra.mxu0 %v311_v10  ;;  %357 = vmatpush.msra.mxu1 %v312_v11  ;;  %v290_v31 = vld [vmem:[#allocation6 + $0x48] sm:$0xff]  ;;  %v307_v33 = vld [vmem:[#allocation6 + $0xd0] sm:$0xff]  ;;  %v288_v35 = vld [vmem:[#allocation6 + $0x38] sm:$0xff] }
  0x3f   : > { %378 = vmatpush.msra.mxu2 %v319_v21  ;;  %v287_v34 = vld [vmem:[#allocation6 + $0x30] sm:$0xff]  ;;  %v304_v36 = vld [vmem:[#allocation6 + $0xb8] sm:$0xff]  ;;  %v285_v38 = vld [vmem:[#allocation6 + $0x20] sm:$0xff] }
  0x40   : > { %335 = vmatpush.msra.mxu0 %v308_v12  ;;  %358 = vmatpush.msra.mxu1 %v309_v13  ;;  %v284_v37 = vld [vmem:[#allocation6 + $0x18] sm:$0xff]  ;;  %v301_v39 = vld [vmem:[#allocation6 + $0xa0] sm:$0xff]  ;;  %v282_v41 = vld [vmem:[#allocation6 + $0x8] sm:$0xff] }
  0x41   : > { %379 = vmatpush.msra.mxu2 %v316_v24  ;;  %v281_v40 = vld [vmem:[#allocation6] sm:$0xff]  ;;  %v298_v43 = vld [vmem:[#allocation6 + $0x88] sm:$0xff]  ;;  %v295_v44 = vld [vmem:[#allocation6 + $0x70] sm:$0xff] }
  0x42   : > { %336 = vmatpush.msra.mxu0 %v305_v16  ;;  %359 = vmatpush.msra.mxu1 %v306_v17  ;;  %v279_v42 = vld [vmem:[%s1566_s19] sm:$0xff]  ;;  %v292_v45 = vld [vmem:[#allocation6 + $0x58] sm:$0xff]  ;;  %v286_v48 = vld [vmem:[#allocation6 + $0x28] sm:$0xff] }
  0x43   : > { %380 = vmatpush.msra.mxu2 %v313_v27  ;;  %v289_v46 = vld [vmem:[#allocation6 + $0x40] sm:$0xff]  ;;  %v280_v47 = vld [vmem:[%s1566_s19 + $0x8] sm:$0xff]  ;;  %v283_v49 = vld [vmem:[#allocation6 + $0x10] sm:$0xff]  ;;  %s1356_s19 = sshra.s32 %s992_s9, 4  ;;  %s1357_s19 = int_to_ptr.hbm [resolvable:$true] %s1356_s19 }
  0x44   : > { %337 = vmatpush.msra.mxu0 %v302_v19  ;;  %360 = vmatpush.msra.mxu1 %v303_v20  ;;  %s1358_s0 = scalar_lea.hbm %s1357_s19, 16  ;;  %p1363_p11 = scmp.lt.s32.totalorder %s1357_s19, %s1829_s5 }
  0x45   : > { %381 = vmatpush.msra.mxu2 %v310_v30  ;;  %p1359_p1 = scmp.ne.s32.totalorder %s1357_s19, %s1358_s0 }
  0x46   : > { %338 = vmatpush.msra.mxu0 %v299_v22  ;;  %361 = vmatpush.msra.mxu1 %v300_v23 }
  0x47   : > { %382 = vmatpush.msra.mxu2 %v307_v33  ;;  %p1360_p4 = pnand %p1359_p1, %p1530_p5 }
  0x48   : > { %339 = vmatpush.msra.mxu0 %v296_v25  ;;  %362 = vmatpush.msra.mxu1 %v297_v26 }
  0x49   : > { %383 = vmatpush.msra.mxu2 %v304_v36  ;;  %p1361_p8 = pneg %p1360_p4 }
  0x4a   : > { %340 = vmatpush.msra.mxu0 %v293_v28  ;;  %363 = vmatpush.msra.mxu1 %v294_v29 }
  0x4b   : > { %384 = vmatpush.msra.mxu2 %v301_v39 }
  0x4c   : > { %341 = vmatpush.msra.mxu0 %v290_v31  ;;  %364 = vmatpush.msra.mxu1 %v291_v32 }
  0x4d   : > { %385 = vmatpush.msra.mxu2 %v298_v43 }
  0x4e   : > { %342 = vmatpush.msra.mxu0 %v287_v34  ;;  %365 = vmatpush.msra.mxu1 %v288_v35 }
  0x4f   : > { %386 = vmatpush.msra.mxu2 %v295_v44 }
  0x50   : > { %343 = vmatpush.msra.mxu0 %v284_v37  ;;  %366 = vmatpush.msra.mxu1 %v285_v38 }
  0x51   : > { %387 = vmatpush.msra.mxu2 %v292_v45 }
  0x52   : > { %344 = vmatpush.msra.mxu0 %v281_v40  ;;  %367 = vmatpush.msra.mxu1 %v282_v41 }
  0x53   : > { %345 = vmatmul.f32.vlgmr.msra.gmra.mxu0 %v279_v42  ;;  %368 = vmatmul.f32.vlgmr.msra.gmra.mxu1 %v279_v42 }
  0x54   : > { %388 = vmatpush.msra.mxu2 %v289_v46 }
  0x56   : > { %389 = vmatpush.msra.mxu2 %v286_v48 }
  0x58   : > { %390 = vmatpush.msra.mxu2 %v283_v49 }
  0x59   : > { %391 = vmatmul.f32.vlgmr.msra.gmra.mxu2 %v279_v42 }
  0x5b   : > { %371 = vmatmul.f32.gmra.mxu1 %v280_v47  ;;  %348 = vmatmul.f32.gmra.mxu0 %v280_v47 }
  0x61   : > { %394 = vmatmul.f32.gmra.mxu2 %v280_v47 }
  0xd0   : > { %v346_v51 = vpop.f32.mrf.mxu0  ;;  %v369_v52 = vpop.f32.mrf.mxu1 }
  0xd1   : > { %v407_v53 = vmul.f32 %v406_v50, %v346_v51  ;;  %529 = vrot.lane.b32.xlu1 %v369_v52, %s1420_s30 }
  0xd3   : > { %525 = vrot.lane.b32.xlu2 %v407_v53, %s1420_s30 }
  0xd8   : > { %v372_v54 = vpop.f32.mrf.mxu1  ;;  %v349_v55 = vpop.f32.mrf.mxu0 }
  0xd9   : > { %531 = vrot.lane.b32.xlu1 %v372_v54, %s1420_s30  ;;  %1097 = vmatpush.xpose.msk.msra.mxu3 %vm409_vm0, %v372_v54  ;;  %v408_v56 = vmul.f32 %v406_v50, %v349_v55 }
  0xdb   : > { %657 = vrot.lane.b32.xlu2 %v372_v54, %s1421_s15 }
  0xdc   : > { %v392_v57 = vpop.f32.mrf.mxu2 }
  0xdd   : > { %1098 = vmatpush.xpose.msk.msra.mxu3 %vm409_vm0, %v369_v52 }
  0xe0   : > { %1099 = vmatmul.msk.f32.vlgmr.msra.gmra.mxu3 %vm409_vm0, %v407_v53 }
  0xe1   : > { %527 = vrot.lane.b32.xlu1 %v408_v56, %s1420_s30 }
  0xe3   : > { %651 = vrot.lane.b32.xlu2 %v407_v53, %s1421_s15 }
  0xe4   : > { %v395_v58 = vpop.f32.mrf.mxu2 }
  0xe5   : > { %486 = vmatpush.msrb.mxu3 %v395_v58  ;;  %v1204_v9 = vpack.i.bf16 %v392_v57, %v395_v58 }
  0xe7   : > { %487 = vmatpush.msrb.mxu3 %v392_v57 }
  0xe8   : > { %1100 = vmatmul.msk.f32.gmra.mxu3 %vm409_vm0, %v408_v56 }
  0xe9   : > { %781 = vrot.lane.b32.xlu1 %v372_v54, %s1422_s16 }
  0xeb   : > { %779 = vrot.lane.b32.xlu2 %v369_v52, %s1422_s16 }
  0xf1   : > { %775 = vrot.lane.b32.xlu1 %v407_v53, %s1422_s16 }
  0xf3   : > { %653 = vrot.lane.b32.xlu2 %v408_v56, %s1421_s15 }
 0x12d   : > { %v526_v59 = vpop.permute.xlu2 %525 }
 0x135   : > { %v658_v60 = vpop.permute.xlu2 %657 }
 0x136   : > { %1109 = vmatpush.xpose.msk.msrb.mxu2 %vm409_vm0, %v658_v60 }
 0x13d   : > { %v652_v14 = vpop.permute.xlu2 %651 }
 0x143   : > { %v530_v61 = vpop.permute.xlu1 %529 }
 0x145   : > { %v780_v20 = vpop.permute.xlu2 %779 }
 0x14b   : > { %v532_v62 = vpop.permute.xlu1 %531 }
 0x14c   : > { %1103 = vmatpush.xpose.msk.msra.mxu3 %vm409_vm0, %v532_v62 }
 0x14d   : > { %v654_v23 = vpop.permute.xlu2 %653 }
 0x150   : > { %1104 = vmatpush.xpose.msk.msra.mxu3 %vm409_vm0, %v530_v61 }
 0x153   : > { %v528_v12 = vpop.permute.xlu1 %527 }
 0x15b   : > { %v782_v19 = vpop.permute.xlu1 %781 }
 0x163   : > { %v439_v2 = vpop.f32.mrf.mxu3  ;;  %v776_v24 = vpop.permute.xlu1 %775 }
 0x164   : > { %v445_v3 = vsel %vm404_vm1, -3.4028235e+38, %v439_v2 }
 0x165   : > { %v448_v4 = vsel %vm447_vm2, %v445_v3, -inf }
 0x166   : > { %449 = vmax.xlane.f32.xlu0 %v448_v4 }
 0x16b   : > { %v442_v6 = vpop.f32.mrf.mxu3 }
 0x16c   : > { %v446_v7 = vsel %vm405_vm3, -3.4028235e+38, %v442_v6 }
 0x16d   : > { %v451_v8 = vsel %vm447_vm2, %v446_v7, -inf }
 0x16e   : > { %452 = vmax.xlane.f32.xlu0 %v451_v8 }
 0x182   : > { %655 = vrot.lane.b32.xlu0 %v369_v52, %s1421_s15 }
 0x18a   : > { %777 = vrot.lane.b32.xlu0 %v408_v56, %s1422_s16 }
 0x192   : > { %1205 = vrot.lane.b32.xlu0 %v1204_v9, %s1420_s30 }
 0x1d9   : > { %v450_v10 = vpop.xlane.xlu0 %449 }
 0x1da   : > { %v454_v11 = vsub.f32 %v445_v3, %v450_v10 }
 0x1dc   : > { %v456_v13 = vmul.f32 1.442695, %v454_v11 }
 0x1de   : > { %1220 = vpow2.f32 %v456_v13 }
 0x1e1   : > { %v453_v15 = vpop.xlane.xlu0 %452 }
 0x1e2   : > { %v455_v16 = vsub.f32 %v446_v7, %v453_v15 }
 0x1e4   : > { %v1617_v17 = vpop.eup %1220  ;;  %v458_v18 = vmul.f32 1.442695, %v455_v16 }
 0x1e5   : > { %1101 = vmatmul.msk.f32.vlgmr.msrb.gmra.mxu3 %vm447_vm2, %v1617_v17 }
 0x1e6   : > { %1222 = vpow2.f32 %v458_v18  ;;  %1115 = vmatpush.xpose.msk.msrb.mxu3 %vm409_vm0, %v782_v19 }
 0x1ea   : > { %1116 = vmatpush.xpose.msk.msrb.mxu3 %vm409_vm0, %v780_v20 }
 0x1ec   : > { %v1623_v21 = vpop.eup %1222 }
 0x1ed   : > { %1102 = vmatmul.msk.f32.gmra.mxu3 %vm447_vm2, %v1623_v21 }
 0x1f4   : > { %v656_v22 = vpop.permute.xlu0 %655 }
 0x1f5   : > { %1105 = vmatmul.msk.f32.vlgmr.msra.gmra.mxu3 %vm409_vm0, %v526_v59  ;;  %1110 = vmatpush.xpose.msk.msrb.mxu2 %vm409_vm0, %v656_v22  ;;  %v460_v22 = vsel %vm447_vm2, %v1617_v17, 0.0 }
 0x1f8   : > { %1111 = vmatmul.msk.f32.vlgmr.msrb.gmra.mxu2 %vm409_vm0, %v652_v14 }
 0x1fc   : > { %v778_v25 = vpop.permute.xlu0 %777 }
 0x1fd   : > { %1106 = vmatmul.msk.f32.gmra.mxu3 %vm409_vm0, %v528_v12 }
 0x200   : > { %1112 = vmatmul.msk.f32.gmra.mxu2 %vm409_vm0, %v654_v23 }
 0x204   : > { %v1206_v26 = vpop.permute.xlu0 %1205 }
 0x205   : > { %1117 = vmatmul.msk.f32.vlgmr.msrb.gmra.mxu3 %vm409_vm0, %v776_v24  ;;  %v1207_v27 = vunpack.i.l.bf16 %v1206_v26  ;;  %v1208_v28 = vunpack.i.h.bf16 %v1206_v26  ;;  %v463_v24 = vsel %vm447_vm2, %v1623_v21, 0.0 }
 0x207   : > { %612 = vmatpush.msrb.mxu0 %v1207_v27 }
 0x209   : > { %613 = vmatpush.msrb.mxu0 %v1208_v28 }
 0x20d   : > { %1118 = vmatmul.msk.f32.gmra.mxu3 %vm409_vm0, %v778_v25 }
 0x268   : > { %v1634_v29 = vpop.f32.mrf.mxu3 }
 0x270   : > { %v1636_v30 = vpop.f32.mrf.mxu3 }
 0x278   : > { %v558_v31 = vpop.f32.mrf.mxu3 }
 0x279   : > { %v564_v32 = vsel %vm404_vm1, -3.4028235e+38, %v558_v31 }
 0x27a   : > { %v566_v33 = vsel %vm447_vm2, %v564_v32, -inf }
 0x27b   : > { %567 = vmax.xlane.f32.xlu1 %v566_v33  ;;  %v684_v34 = vpop.f32.mrf.mxu2 }
 0x27c   : > { %v690_v35 = vsel %vm404_vm1, -3.4028235e+38, %v684_v34 }
 0x27d   : > { %v692_v36 = vsel %vm447_vm2, %v690_v35, -inf }
 0x27e   : > { %693 = vmax.xlane.f32.xlu0 %v692_v36 }
 0x280   : > { %v561_v37 = vpop.f32.mrf.mxu3 }
 0x281   : > { %v565_v38 = vsel %vm405_vm3, -3.4028235e+38, %v561_v37 }
 0x282   : > { %v569_v39 = vsel %vm447_vm2, %v565_v38, -inf }
 0x283   : > { %570 = vmax.xlane.f32.xlu2 %v569_v39  ;;  %v687_v40 = vpop.f32.mrf.mxu2 }
 0x284   : > { %v691_v41 = vsel %vm405_vm3, -3.4028235e+38, %v687_v40 }
 0x285   : > { %v695_v42 = vsel %vm447_vm2, %v691_v41, -inf }
 0x286   : > { %696 = vmax.xlane.f32.xlu1 %v695_v42 }
 0x288   : > { %v808_v43 = vpop.f32.mrf.mxu3 }
 0x289   : > { %v814_v44 = vsel %vm404_vm1, -3.4028235e+38, %v808_v43 }
 0x28a   : > { %v816_v45 = vsel %vm447_vm2, %v814_v44, -inf }
 0x28b   : > { %817 = vmax.xlane.f32.xlu2 %v816_v45 }
 0x290   : > { %v811_v46 = vpop.f32.mrf.mxu3 }
 0x291   : > { %v815_v47 = vsel %vm405_vm3, -3.4028235e+38, %v811_v46 }
 0x292   : > { %1215 = vrot.lane.b32.xlu0 %v1204_v9, %s1422_s16  ;;  %v819_v48 = vsel %vm447_vm2, %v815_v47, -inf }
 0x293   : > { %820 = vmax.xlane.f32.xlu1 %v819_v48 }
 0x2a3   : > { %1210 = vrot.lane.b32.xlu2 %v1204_v9, %s1421_s15 }
 0x2ee   : > { %v568_v49 = vpop.xlane.xlu1 %567 }
 0x2ef   : > { %v572_v50 = vsub.f32 %v564_v32, %v568_v49 }
 0x2f1   : > { %v574_v51 = vmul.f32 1.442695, %v572_v50  ;;  %v694_v52 = vpop.xlane.xlu0 %693 }
 0x2f2   : > { %v698_v53 = vsub.f32 %v690_v35, %v694_v52  ;;  %v945_v52 = vld [vmem:[#allocation8 + $0x70] sm:$0xff] }
 0x2f3   : > { %1224 = vpow2.f32 %v574_v51  ;;  %v946_v51 = vld [vmem:[#allocation8 + $0x78] sm:$0xff] }
 0x2f4   : > { %v700_v54 = vmul.f32 1.442695, %v698_v53  ;;  %951 = vmatpush.msrb.mxu1 %v946_v51  ;;  %v941_v51 = vld [vmem:[#allocation8 + $0x50] sm:$0xff] }
 0x2f6   : > { %1226 = vpow2.f32 %v700_v54  ;;  %v571_v55 = vpop.xlane.xlu2 %570  ;;  %952 = vmatpush.msrb.mxu1 %v945_v52  ;;  %v940_v52 = vld [vmem:[#allocation8 + $0x48] sm:$0xff] }
 0x2f7   : > { %v573_v56 = vsub.f32 %v565_v38, %v571_v55 }
 0x2f9   : > { %v1225_v57 = vpop.eup %1224  ;;  %v576_v58 = vmul.f32 1.442695, %v573_v56  ;;  %v697_v59 = vpop.xlane.xlu1 %696  ;;  %v936_v56 = vld [vmem:[#allocation8 + $0x28] sm:$0xff] }
 0x2fa   : > { %1107 = vmatmul.msk.f32.vlgmr.msrb.gmra.mxu0 %vm447_vm2, %v1225_v57  ;;  %v699_v61 = vsub.f32 %v691_v41, %v697_v59  ;;  %v578_v7 = vsel %vm447_vm2, %v1225_v57, 0.0  ;;  %v935_v57 = vld [vmem:[#allocation8 + $0x20] sm:$0xff] }
 0x2fb   : > { %1228 = vpow2.f32 %v576_v58 }
 0x2fc   : > { %v1227_v60 = vpop.eup %1226  ;;  %v702_v1 = vmul.f32 1.442695, %v699_v61 }
 0x2fd   : > { %v704_v62 = vsel %vm447_vm2, %v1227_v60, 0.0 }
 0x2fe   : > { %v818_v63 = vpop.xlane.xlu2 %817  ;;  %705 = vadd.xlane.f32.xlu1 %v704_v62 }
 0x2ff   : > { %v822_v0 = vsub.f32 %v814_v44, %v818_v63  ;;  %v944_v63 = vld [vmem:[#allocation8 + $0x68] sm:$0xff] }
 0x300   : > { %953 = vmatpush.msrb.mxu1 %v944_v63 }
 0x301   : > { %v1229_v2 = vpop.eup %1228  ;;  %v824_v3 = vmul.f32 1.442695, %v822_v0 }
 0x302   : > { %1108 = vmatmul.msk.f32.gmra.mxu0 %vm447_vm2, %v1229_v2  ;;  %v581_v4 = vsel %vm447_vm2, %v1229_v2, 0.0 }
 0x303   : > { %1230 = vpow2.f32 %v824_v3  ;;  %582 = vadd.xlane.f32.xlu0 %v581_v4 }
 0x304   : > { %1232 = vpow2.f32 %v702_v1  ;;  %v1216_v5 = vpop.permute.xlu0 %1215 }
 0x305   : > { %v1217_v6 = vunpack.i.l.bf16 %v1216_v5  ;;  %v1218_v10 = vunpack.i.h.bf16 %v1216_v5 }
 0x306   : > { %v1211_v8 = vpop.permute.xlu2 %1210  ;;  %v821_v9 = vpop.xlane.xlu1 %820  ;;  %579 = vadd.xlane.f32.xlu1 %v578_v7 }
 0x307   : > { %v1212_v11 = vunpack.i.l.bf16 %v1211_v8  ;;  %v823_v12 = vsub.f32 %v815_v47, %v821_v9  ;;  %860 = vmatpush.msra.mxu0 %v1217_v6  ;;  %v1213_v14 = vunpack.i.h.bf16 %v1211_v8 }
 0x309   : > { %v1231_v13 = vpop.eup %1230  ;;  %v826_v15 = vmul.f32 1.442695, %v823_v12  ;;  %736 = vmatpush.msra.mxu2 %v1212_v11  ;;  %861 = vmatpush.msra.mxu0 %v1218_v10 }
 0x30a   : > { %v1233_v16 = vpop.eup %1232  ;;  %1119 = vmatmul.msk.f32.vlgmr.msra.gmra.mxu0 %vm447_vm2, %v1231_v13  ;;  %v828_v18 = vsel %vm447_vm2, %v1231_v13, 0.0 }
 0x30b   : > { %1234 = vpow2.f32 %v826_v15  ;;  %829 = vadd.xlane.f32.xlu2 %v828_v18  ;;  %737 = vmatpush.msra.mxu2 %v1213_v14  ;;  %v707_v19 = vsel %vm447_vm2, %v1233_v16, 0.0 }
 0x30c   : > { %1113 = vmatmul.msk.f32.vlgmr.msra.gmra.mxu2 %vm447_vm2, %v1227_v60 }
 0x30e   : > { %708 = vadd.xlane.f32.xlu1 %v707_v19 }
 0x311   : > { %v1235_v20 = vpop.eup %1234 }
 0x312   : > { %1120 = vmatmul.msk.f32.gmra.mxu0 %vm447_vm2, %v1235_v20  ;;  %v831_v23 = vsel %vm447_vm2, %v1235_v20, 0.0 }
 0x314   : > { %1114 = vmatmul.msk.f32.gmra.mxu2 %vm447_vm2, %v1233_v16 }
 0x316   : > { %461 = vadd.xlane.f32.xlu1 %v460_v22 }
 0x31e   : > { %832 = vadd.xlane.f32.xlu1 %v831_v23 }
 0x326   : > { %464 = vadd.xlane.f32.xlu1 %v463_v24 }
 0x371   : > { %v1680_v25 = vpop.xlane.xlu1 %705 }
 0x372   : > { %1236 = vrcp.f32 %v1680_v25  ;;  %vm750_vm5 = vweird.f32 %v1680_v25  ;;  %v754_v48 = vand.u32 2147483647, %v1680_v25  ;;  %v756_v49 = vand.u32 2147483648, %v1680_v25 }
 0x374   : > { %v757_v13 = vor.u32 1.1754944e-38, %v756_v49  ;;  %vm755_vm3 = vcmp.eq.f32.partialorder %v754_v48, 8.507059e+37  ;;  %v943_v49 = vld [vmem:[#allocation8 + $0x60] sm:$0xff] }
 0x375   : > { %954 = vmatpush.msrb.mxu1 %v943_v49 }
 0x376   : > { %v1683_v26 = vpop.xlane.xlu0 %582 }
 0x377   : > { %1238 = vrcp.f32 %v1683_v26  ;;  %v615_v17 = vpop.f32.mrf.mxu0  ;;  %vm640_vm7 = vweird.f32 %v1683_v26  ;;  %v644_v3 = vand.u32 2147483647, %v1683_v26  ;;  %v646_v4 = vand.u32 2147483648, %v1683_v26 }
 0x378   : > { %v1686_v27 = vpop.eup %1236 }
 0x379   : > { %v580_v28 = vpop.xlane.xlu1 %579  ;;  %v746_v31 = vmul.f32 %v1686_v27, %v1680_v25  ;;  %vm751_vm8 = vweird.f32 %v1686_v27  ;;  %v647_v18 = vor.u32 1.1754944e-38, %v646_v4 }
 0x37a   : > { %1240 = vrcp.f32 %v580_v28  ;;  %v632_v40 = vand.u32 2147483648, %v580_v28  ;;  %v630_v41 = vand.u32 2147483647, %v580_v28  ;;  %vm626_vm6 = vweird.f32 %v580_v28  ;;  %vm1740_vm13 = vmor %vm750_vm5, %vm751_vm8 }
 0x37b   : > { %v747_v35 = vsub.f32 1.0, %v746_v31 }
 0x37c   : > { %v633_v54 = vor.u32 1.1754944e-38, %v632_v40  ;;  %vm1717_vm10 = vcmp.eq.f32.partialorder %v630_v41, 8.507059e+37 }
 0x37d   : > { %v1690_v32 = vpop.eup %1238  ;;  %v748_v42 = vmul.f32 %v1686_v27, %v747_v35 }
 0x37e   : > { %v636_v21 = vmul.f32 %v1690_v32, %v1683_v26  ;;  %v1694_v33 = vpop.xlane.xlu2 %829  ;;  %vm641_vm11 = vweird.f32 %v1690_v32 }
 0x37f   : > { %1242 = vrcp.f32 %v1694_v33  ;;  %v1701_v45 = vpop.f32.mrf.mxu0  ;;  %v749_v58 = vadd.f32 %v1686_v27, %v748_v42  ;;  %v880_v60 = vand.u32 2147483648, %v1694_v33  ;;  %v878_v2 = vand.u32 2147483647, %v1694_v33  ;;  %vm1748_vm14 = vmor %vm640_vm7, %vm641_vm11 }
 0x380   : > { %v1241_v34 = vpop.eup %1240  ;;  %v637_v38 = vsub.f32 1.0, %v636_v21  ;;  %vm874_vm15 = vweird.f32 %v1694_v33 }
 0x381   : > { %v622_v36 = vmul.f32 %v1241_v34, %v580_v28  ;;  %v1697_v37 = vpop.xlane.xlu1 %708  ;;  %vm627_vm4 = vweird.f32 %v1241_v34  ;;  %v753_v11 = vsel %vm1740_vm13, %v1686_v27, %v749_v58  ;;  %v881_v12 = vor.u32 1.1754944e-38, %v880_v60  ;;  %v934_v58 = vld [vmem:[#allocation8 + $0x18] sm:$0xff]  ;;  %v932_v60 = vld [vmem:[#allocation8 + $0x8] sm:$0xff] }
 0x382   : > { %1244 = vrcp.f32 %v1697_v37  ;;  %v638_v47 = vmul.f32 %v1690_v32, %v637_v38  ;;  %vm1713_vm9 = vmor %vm626_vm6, %vm627_vm4  ;;  %vm879_vm2 = vcmp.eq.f32.partialorder %v878_v2, 8.507059e+37  ;;  %vm645_vm4 = vcmp.eq.f32.partialorder %v644_v3, 8.507059e+37 }
 0x383   : > { %v623_v39 = vsub.f32 1.0, %v622_v36  ;;  %v758_v23 = vsel %vm755_vm3, %v757_v13, %v753_v11  ;;  %vm764_vm6 = vweird.f32 %v1697_v37  ;;  %v768_v31 = vand.u32 2147483647, %v1697_v37 }
 0x384   : > { %v639_v0 = vadd.f32 %v1690_v32, %v638_v47  ;;  %vm925_vm3 = vcmask 523264  }
 0x385   : > { %v1243_v43 = vpop.eup %1242  ;;  %v624_v44 = vmul.f32 %v1241_v34, %v623_v39  ;;  %vm769_vm8 = vcmp.eq.f32.partialorder %v768_v31, 8.507059e+37 }
 0x386   : > { %v870_v46 = vmul.f32 %v1243_v43, %v1694_v33  ;;  %vm875_vm12 = vweird.f32 %v1243_v43  ;;  %v643_v15 = vsel %vm1748_vm14, %v1690_v32, %v639_v0 }
 0x387   : > { %v625_v50 = vadd.f32 %v1241_v34, %v624_v44  ;;  %vm876_vm1 = vmor %vm874_vm15, %vm875_vm12  ;;  %v863_v19 = vpop.f32.mrf.mxu0  ;;  %v648_v27 = vsel %vm645_vm4, %v647_v18, %v643_v15 }
 0x388   : > { %v1710_v53 = vpop.eup %1244  ;;  %v871_v55 = vsub.f32 1.0, %v870_v46  ;;  %v650_v32 = vmul.f32 %v648_v27, %v1701_v45 }
 0x389   : > { %v760_v59 = vmul.f32 %v1710_v53, %v1697_v37  ;;  %v1726_v61 = vpop.xlane.xlu1 %461  ;;  %v629_v62 = vsel %vm1713_vm9, %v1241_v34, %v625_v50  ;;  %vm765_vm5 = vweird.f32 %v1710_v53  ;;  %v942_v50 = vld [vmem:[#allocation8 + $0x58] sm:$0xff] }
 0x38a   : > { %v872_v1 = vmul.f32 %v1243_v43, %v871_v55  ;;  %v634_v6 = vsel %vm1717_vm10, %v633_v54, %v629_v62  ;;  %vm766_vm7 = vmor %vm764_vm6, %vm765_vm5  ;;  %955 = vmatpush.msrb.mxu1 %v942_v50  ;;  %v938_v54 = vld [vmem:[#allocation8 + $0x38] sm:$0xff]  ;;  %v937_v55 = vld [vmem:[#allocation8 + $0x30] sm:$0xff]  ;;  %v506_v7 = vand.u32 2147483648, %v1726_v61  ;;  %vm500_vm14 = vweird.f32 %v1726_v61 }
 0x38b   : > { %v761_v5 = vsub.f32 1.0, %v760_v59  ;;  %v649_v10 = vmul.f32 %v634_v6, %v615_v17  ;;  %v770_v17 = vand.u32 2147483648, %v1697_v37  ;;  %v933_v59 = vld [vmem:[#allocation8 + $0x10] sm:$0xff]  ;;  %v931_v62 = vld [vmem:[#allocation8] sm:$0xff]  ;;  %v504_v8 = vand.u32 2147483647, %v1726_v61 }
 0x38c   : > { %v873_v9 = vadd.f32 %v1243_v43, %v872_v1  ;;  %956 = vmatpush.msrb.mxu1 %v941_v51  ;;  %v507_v11 = vor.u32 1.1754944e-38, %v506_v7  ;;  %vm928_vm5 = vcmask 785408  }
 0x38d   : > { %v762_v14 = vmul.f32 %v1710_v53, %v761_v5  ;;  %901 = vrot.lane.b32.xlu1 %v649_v10, %s1422_s16  ;;  %v771_v33 = vor.u32 1.1754944e-38, %v770_v17 }
 0x38e   : > { %v877_v16 = vsel %vm876_vm1, %v1243_v43, %v873_v9  ;;  %957 = vmatpush.msrb.mxu1 %v940_v52  ;;  %vm505_vm1 = vcmp.eq.f32.partialorder %v504_v8, 8.507059e+37 }
 0x38f   : > { %v882_v20 = vsel %vm879_vm2, %v881_v12, %v877_v16  ;;  %v739_v22 = vpop.f32.mrf.mxu2  ;;  %v763_v26 = vadd.f32 %v1710_v53, %v762_v14  ;;  %v866_v46 = vpop.f32.mrf.mxu0 }
 0x390   : > { %v897_v24 = vmul.f32 %v882_v20, %v863_v19  ;;  %v773_v25 = vmul.f32 %v758_v23, %v739_v22 }
 0x391   : > { %v833_v28 = vpop.xlane.xlu1 %832  ;;  %v767_v21 = vsel %vm766_vm7, %v1710_v53, %v763_v26  ;;  %v939_v53 = vld [vmem:[#allocation8 + $0x40] sm:$0xff] }
 0x392   : > { %1246 = vrcp.f32 %v833_v28  ;;  %909 = vrot.lane.b32.xlu2 %v773_v25, %s1421_s15  ;;  %917 = vrot.lane.b32.xlu0 %v897_v24, %s1420_s30  ;;  %v772_v35 = vsel %vm769_vm8, %v771_v33, %v767_v21  ;;  %v894_v41 = vand.u32 2147483648, %v833_v28  ;;  %v892_v37 = vand.u32 2147483647, %v833_v28 }
 0x393   : > { %vm888_vm10 = vweird.f32 %v833_v28  ;;  %958 = vmatpush.msrb.mxu1 %v939_v53  ;;  %1248 = vrcp.f32 %v1726_v61 }
 0x394   : > { %v895_v44 = vor.u32 1.1754944e-38, %v894_v41  ;;  %vm893_vm12 = vcmp.eq.f32.partialorder %v892_v37, 8.507059e+37 }
 0x395   : > { %903 = vrot.lane.b32.xlu1 %v650_v32, %s1422_s16  ;;  %959 = vmatpush.msrb.mxu1 %v938_v54 }
 0x397   : > { %v742_v34 = vpop.f32.mrf.mxu2  ;;  %960 = vmatpush.msrb.mxu1 %v937_v55 }
 0x398   : > { %v1247_v36 = vpop.eup %1246  ;;  %v774_v38 = vmul.f32 %v772_v35, %v742_v34  ;;  %v1219_v34 = vld [vmem:[%s1828_s4] ss:$0 sm:$0xff] }
 0x399   : > { %v884_v39 = vmul.f32 %v1247_v36, %v833_v28  ;;  %vm889_vm9 = vweird.f32 %v1247_v36  ;;  %961 = vmatpush.msrb.mxu1 %v936_v56  ;;  %v1249_v63 = vpop.eup %1248  ;;  %v465_v0 = vpop.xlane.xlu1 %464 }
 0x39a   : > { %911 = vrot.lane.b32.xlu0 %v774_v38, %s1421_s15  ;;  %vm890_vm11 = vmor %vm888_vm10, %vm889_vm9  ;;  %v496_v1 = vmul.f32 %v1249_v63, %v1726_v61  ;;  %1250 = vrcp.f32 %v465_v0  ;;  %vm501_vm13 = vweird.f32 %v1249_v63  ;;  %v520_v18 = vand.u32 2147483648, %v465_v0 }
 0x39b   : > { %v885_v40 = vsub.f32 1.0, %v884_v39  ;;  %962 = vmatpush.msrb.mxu1 %v935_v57  ;;  %vm502_vm15 = vmor %vm500_vm14, %vm501_vm13  ;;  %vm514_vm4 = vweird.f32 %v465_v0  ;;  %v518_v20 = vand.u32 2147483647, %v465_v0 }
 0x39c   : > { %v497_v2 = vsub.f32 1.0, %v496_v1  ;;  %v521_v25 = vor.u32 1.1754944e-38, %v520_v18 }
 0x39d   : > { %v886_v42 = vmul.f32 %v1247_v36, %v885_v40  ;;  %963 = vmatpush.msrb.mxu1 %v934_v58  ;;  %vm519_vm7 = vcmp.eq.f32.partialorder %v518_v20, 8.507059e+37 }
 0x39e   : > { %v498_v4 = vmul.f32 %v1249_v63, %v497_v2 }
 0x39f   : > { %v887_v43 = vadd.f32 %v1247_v36, %v886_v42  ;;  %964 = vmatpush.msrb.mxu1 %v933_v59 }
 0x3a0   : > { %v1251_v3 = vpop.eup %1250  ;;  %v499_v6 = vadd.f32 %v1249_v63, %v498_v4 }
 0x3a1   : > { %v891_v45 = vsel %vm890_vm11, %v1247_v36, %v887_v43  ;;  %965 = vmatpush.msrb.mxu1 %v932_v60  ;;  %v510_v5 = vmul.f32 %v1251_v3, %v465_v0  ;;  %vm515_vm2 = vweird.f32 %v1251_v3 }
 0x3a2   : > { %v896_v47 = vsel %vm893_vm12, %v895_v44, %v891_v45  ;;  %v503_v10 = vsel %vm502_vm15, %v1249_v63, %v499_v6  ;;  %vm516_vm6 = vmor %vm514_vm4, %vm515_vm2 }
 0x3a3   : > { %v898_v48 = vmul.f32 %v896_v47, %v866_v46  ;;  %966 = vmatpush.msrb.mxu1 %v931_v62  ;;  %v511_v9 = vsub.f32 1.0, %v510_v5  ;;  %v508_v13 = vsel %vm505_vm1, %v507_v11, %v503_v10 }
 0x3a4   : > { %v523_v14 = vmul.f32 %v508_v13, %v1634_v29 }
 0x3a5   : > { %919 = vrot.lane.b32.xlu2 %v898_v48, %s1420_s30  ;;  %v512_v12 = vmul.f32 %v1251_v3, %v511_v9  ;;  %s1362_s30 = scalar_lea.hbm %s1829_s5, 32 }
 0x3a6   : > { %p1364_p9 = scmp.lt.s32.totalorder %s1362_s30, %s1358_s0 }
 0x3a7   : > { %v513_v15 = vadd.f32 %v1251_v3, %v512_v12 }
 0x3a8   : > { %p1365_p2 = por %p1364_p9, %p1363_p11 }
 0x3a9   : > { %v517_v24 = vsel %vm516_vm6, %v1251_v3, %v513_v15 }
 0x3aa   : > { %v522_v26 = vsel %vm519_vm7, %v521_v25, %v517_v24  ;;  %p1366_p10 = pnand %p1365_p2, %p1361_p8 }
 0x3ab   : > { %v524_v28 = vmul.f32 %v522_v26, %v1636_v30 }
 0x3ec   : > { %v910_v61 = vpop.permute.xlu2 %909 }
 0x3ff   : > { %v902_v16 = vpop.permute.xlu1 %901  ;;  %v920_v32 = vpop.permute.xlu2 %919 }
 0x400   : > { %v923_v19 = vsel %vm409_vm0, %v523_v14, %v902_v16 }
 0x401   : > { %v926_v23 = vsel %vm925_vm3, %v923_v19, %v910_v61 }
 0x404   : > { %v918_v22 = vpop.permute.xlu0 %917 }
 0x405   : > { %v929_v29 = vsel %vm928_vm5, %v926_v23, %v918_v22 }
 0x406   : > { %967 = vmatmul.f32.vlgmr.msrb.gmra.mxu1 %v929_v29 }
 0x407   : > { %v904_v27 = vpop.permute.xlu1 %903 }
 0x408   : > { %v924_v17 = vsel %vm409_vm0, %v524_v28, %v904_v27 }
 0x40c   : > { %v912_v31 = vpop.permute.xlu0 %911 }
 0x40d   : > { %v927_v21 = vsel %vm925_vm3, %v924_v17, %v912_v31 }
 0x40e   : > { %v930_v33 = vsel %vm928_vm5, %v927_v21, %v920_v32 }
 0x40f   : > { %970 = vmatmul.f32.gmra.mxu1 %v930_v33 }
 0x483   : > { %v968_v35 = vpop.f32.mrf.mxu1 }
 0x484   : > { %v969_v36 = vadd.f32 %v1219_v34, %v968_v35 }
 0x486   : > { %974 = vst [vmem:[%s278_s14] sm:$0xff] %v969_v36 }
 0x48c   : > { %v971_v30 = vpop.f32.mrf.mxu1 }
 0x48d   : > { %v972_v38 = vadd.f32 %v1219_v34, %v971_v30 }
 0x48f   : > { %975 = vst [vmem:[%s278_s14 + $0x8] sm:$0xff] %v972_v38 }
 0x490   : > { %1369 = shalt.err (!%p1366_p10)
}
 0x491   : > { %s1423_s28 = smov 128   ;;  %s1424_s11 = smov 8  }
 0x492   : > { %1138 = dma.vmem_to_hbm [thread:$0]  (%p1530_p5), %s990_s8, 256, %s992_s9, %s977_s18, %s1423_s28, %s1423_s28, %s1424_s11  }
 0x493 PF: > { %s1006_s12 = sand.u32 1, %s1400_s20   ;;  %p1843_p12 = scmp.ge.s32.totalorder %s1412_s23, 2 }
 0x494   : > { %s1007_s13 = scalar_lea.sflag [#allocation5], %s1006_s12 }
 0x495   : > { %p1152_p13 = pnand %p1843_p12, %p1493_p6 }
 0x497   : > { %p1153_p0 = pneg %p1152_p13 }
 0x499   : > { %1395 = dma.done.wait (%p1153_p0), %s1007_s13, 256  }
 0x49a   : > { %1397 = vsyncadd (%p1153_p0), %s1007_s13, 4294967040  ;;  %p20_p3 = scmp.ge.s32.totalorder %s1517_s17, 4   ;;  %s1844_s20 = smov %s1404_s21 }
 0x49b   : > { %s1845_s21 = smov %s1408_s22  ;;  %s1846_s22 = smov %s1526_s24 }
 0x49c   : > { %s1847_s23 = smov %s1517_s17  ;;  %22 = sbr.rel (!%p20_p3) target bundleno = 8 (0x8), region = 93 }
 0x4a1   :  { %1013 = vsyncpa [#allocation4], 1 }
 0x4a2   :  { %1015 = vsyncpa [#allocation4 + $0x1], 1 }
 0x4a3   :  { %1016 = vsyncpa [#allocation7], 1 }
 0x4a4   :  { %1017 = vsyncpa [#allocation5], 1 }
 0x4a5   :  { %1019 = vsyncpa [#allocation5 + $0x1], 1 }

</bundles_post_ra>
